<compile_context>
chip_gen: v7x
topology: tpu7x:2x2x1
jax: 0.10.0
libtpu: 0.0.40
codegen_flags: <defaults>
</compile_context>

<pallas_src>
import functools

import jax
import jax.numpy as jnp
from jax.experimental import pallas as pl
from jax.experimental.pallas import tpu as pltpu

EPS = 1e-5                      # torch.nn.BatchNorm2d default
LANE = 128                      # TPU lane width
VMEM_LIMIT = 32 * 1024 * 1024   # safe scoped-VMEM limit on v5e/v6e/v7x


def _round_up(x, m):
    return (x + m - 1) // m * m


# ------------------------------ Pallas kernels -------------------------------

def bn_stats_kernel(x_ref, sum_ref, sq_ref):
    """Per-image partial per-channel [sum, sum_sq]; combined outside the kernel
    so the image grid axis can stay 'parallel' (v7x megacore, no accumulation race)."""
    x = x_ref[0].astype(jnp.float32)                       # (H, W, C)
    h, w, c = x.shape
    x2 = x.reshape(h * w, c)
    s = jnp.sum(x2, axis=0, keepdims=True)                 # (1, C)
    q = jnp.sum(x2 * x2, axis=0, keepdims=True)
    # (1, 8, C) output blocks keep the sublane dim a multiple of 8; rows are
    # identical copies, row 0 is consumed outside.
    sum_ref[...] = jnp.broadcast_to(s, sum_ref.shape)
    sq_ref[...] = jnp.broadcast_to(q, sq_ref.shape)


def _bnrelu_masked(xpad_ref, scale_ref, shift_ref, *, pad, h_in, w_in):
    """y = max(x*scale + shift, 0) on the interior of a spatially zero-padded
    block; the border is forced back to zero because the conv's zero padding is
    applied *after* BN-ReLU in the reference module."""
    x = xpad_ref[0].astype(jnp.float32)                    # (Hp, Wp, C)
    hp, wp, _ = x.shape
    y = jnp.maximum(x * scale_ref[...] + shift_ref[...], 0.0)
    row = jax.lax.broadcasted_iota(jnp.int32, (hp, wp, 1), 0)
    col = jax.lax.broadcasted_iota(jnp.int32, (hp, wp, 1), 1)
    inside = (row >= pad) & (row < pad + h_in) & (col >= pad) & (col < pad + w_in)
    return jnp.where(inside, y, 0.0).astype(jnp.bfloat16)


def _tap_conv(pb_ref, w_ref, *, k, stride, h_out, w_out):
    """acc = sum_{taps} window(pb, tap) @ w[tap] with f32 MXU accumulation.

    pb_ref: (Hp, Wp, Cin) bf16 VMEM scratch holding the padded BN-ReLU'd input.
    w_ref : (k*k, Cin, Cout) bf16, VMEM-resident (constant index_map).
    """
    cin = pb_ref.shape[-1]
    cout = w_ref.shape[-1]
    acc = jnp.zeros((h_out * w_out, cout), jnp.float32)
    for kh in range(k):
        for kw in range(k):
            if stride == 1:
                tap = pb_ref[pl.ds(kh, h_out), pl.ds(kw, w_out), :]
            else:
                tap = pb_ref[pl.ds(kh, h_out, stride), pl.ds(kw, w_out, stride), :]
            acc = acc + jnp.dot(tap.reshape(h_out * w_out, cin),
                                w_ref[kh * k + kw],
                                preferred_element_type=jnp.float32)
    return acc


def conv_bn_stats_kernel(xpad_ref, scale_ref, shift_ref, w_ref, b_ref,
                         o_ref, sum_ref, sq_ref, pb_ref,
                         *, k, stride, pad, h_in, w_in, h_out, w_out):
    """Fused: BN1-ReLU(x) -> tap-accumulation conv (stride s) + bias ->
    bf16 output + per-image partial BN2 stats of that output (f32 accumulator)."""
    pb_ref[...] = _bnrelu_masked(xpad_ref, scale_ref, shift_ref,
                                 pad=pad, h_in=h_in, w_in=w_in)
    acc = _tap_conv(pb_ref, w_ref, k=k, stride=stride, h_out=h_out, w_out=w_out)
    acc = acc + b_ref[...]
    cout = acc.shape[-1]
    o_ref[...] = acc.reshape(1, h_out, w_out, cout).astype(o_ref.dtype)
    s = jnp.sum(acc, axis=0, keepdims=True)                # (1, Cout), from f32 acc
    q = jnp.sum(acc * acc, axis=0, keepdims=True)
    sum_ref[...] = jnp.broadcast_to(s, sum_ref.shape)
    sq_ref[...] = jnp.broadcast_to(q, sq_ref.shape)


def conv_shortcut_kernel(ypad_ref, scale_ref, shift_ref, w_ref, b_ref,
                         xs_ref, ws_ref, o_ref, pb_ref,
                         *, k, pad, h_in, w_in, h_out, w_out):
    """Fused: BN2-ReLU(y1) -> tap conv (stride 1) + bias + 1x1 shortcut + residual."""
    pb_ref[...] = _bnrelu_masked(ypad_ref, scale_ref, shift_ref,
                                 pad=pad, h_in=h_in, w_in=w_in)
    acc = _tap_conv(pb_ref, w_ref, k=k, stride=1, h_out=h_out, w_out=w_out)
    cin_sc = xs_ref.shape[-1]
    sc = jnp.dot(xs_ref[0].reshape(h_out * w_out, cin_sc), ws_ref[...],
                 preferred_element_type=jnp.float32)
    acc = acc + b_ref[...] + sc
    cout = acc.shape[-1]
    o_ref[...] = acc.reshape(1, h_out, w_out, cout).astype(o_ref.dtype)


# -------------------------------- wrappers ------------------------------------

def bn_stats(x_nhwc):
    """(N,H,W,C) -> per-channel (sum, sum_sq) over all N*H*W pixels (Pallas reduction)."""
    n, h, w, c = x_nhwc.shape
    sums, sqs = pl.pallas_call(
        bn_stats_kernel,
        out_shape=(jax.ShapeDtypeStruct((n, 8, c), jnp.float32),
                   jax.ShapeDtypeStruct((n, 8, c), jnp.float32)),
        grid=(n,),
        in_specs=[pl.BlockSpec((1, h, w, c), lambda i: (i, 0, 0, 0))],
        out_specs=(pl.BlockSpec((1, 8, c), lambda i: (i, 0, 0)),
                   pl.BlockSpec((1, 8, c), lambda i: (i, 0, 0))),
        compiler_params=pltpu.CompilerParams(
            dimension_semantics=("parallel",),
            vmem_limit_bytes=VMEM_LIMIT),
    )(x_nhwc)
    return jnp.sum(sums[:, 0, :], axis=0), jnp.sum(sqs[:, 0, :], axis=0)


def fold_bn(ssum, ssq, count, gamma, beta):
    """Fold batch stats + affine params into per-channel scale/shift (C-length math)."""
    mean = ssum / count
    var = ssq / count - mean * mean        # biased variance (training-mode BN)
    # TODO(synk): E[x^2]-E[x]^2 can cancel for large-mean activations; a shifted /
    # Welford-style accumulation would be more robust.
    inv = jax.lax.rsqrt(var + EPS)
    scale = gamma.astype(jnp.float32) * inv
    shift = beta.astype(jnp.float32) - mean * scale
    return scale.reshape(1, -1), shift.reshape(1, -1)


def conv1_bn_fused(xpad, scale, shift, w_taps, bias,
                   *, k, stride, pad, h_in, w_in, h_out, w_out):
    n, hp, wp, cin = xpad.shape
    cout = w_taps.shape[-1]
    kernel = functools.partial(conv_bn_stats_kernel, k=k, stride=stride, pad=pad,
                               h_in=h_in, w_in=w_in, h_out=h_out, w_out=w_out)
    flops = 2 * n * h_out * w_out * k * k * cin * cout
    bytes_accessed = int(xpad.size * 4 + w_taps.size * 2
                         + n * h_out * w_out * cout * 2)
    y1, s2, q2 = pl.pallas_call(
        kernel,
        out_shape=(jax.ShapeDtypeStruct((n, h_out, w_out, cout), jnp.bfloat16),
                   jax.ShapeDtypeStruct((n, 8, cout), jnp.float32),
                   jax.ShapeDtypeStruct((n, 8, cout), jnp.float32)),
        grid=(n,),
        in_specs=[
            pl.BlockSpec((1, hp, wp, cin), lambda i: (i, 0, 0, 0)),
            pl.BlockSpec((1, cin), lambda i: (0, 0)),                 # resident
            pl.BlockSpec((1, cin), lambda i: (0, 0)),                 # resident
            pl.BlockSpec((k * k, cin, cout), lambda i: (0, 0, 0)),    # resident weights
            pl.BlockSpec((1, cout), lambda i: (0, 0)),                # resident
        ],
        out_specs=(
            pl.BlockSpec((1, h_out, w_out, cout), lambda i: (i, 0, 0, 0)),
            pl.BlockSpec((1, 8, cout), lambda i: (i, 0, 0)),
            pl.BlockSpec((1, 8, cout), lambda i: (i, 0, 0)),
        ),
        scratch_shapes=[pltpu.VMEM((hp, wp, cin), jnp.bfloat16)],
        compiler_params=pltpu.CompilerParams(
            dimension_semantics=("parallel",),
            vmem_limit_bytes=VMEM_LIMIT),
        cost_estimate=pl.CostEstimate(flops=flops, transcendentals=0,
                                      bytes_accessed=bytes_accessed),
    )(xpad, scale, shift, w_taps, bias)
    return y1, jnp.sum(s2[:, 0, :], axis=0), jnp.sum(q2[:, 0, :], axis=0)


def conv2_shortcut_fused(ypad, scale, shift, w_taps, bias, xs, wsc,
                         *, k, pad, h_in, w_in, h_out, w_out):
    n, hp, wp, cmid = ypad.shape
    cout = w_taps.shape[-1]
    csc = xs.shape[-1]
    kernel = functools.partial(conv_shortcut_kernel, k=k, pad=pad,
                               h_in=h_in, w_in=w_in, h_out=h_out, w_out=w_out)
    flops = 2 * n * h_out * w_out * (k * k * cmid + csc) * cout
    bytes_accessed = int(ypad.size * 2 + xs.size * 2
                         + (w_taps.size + wsc.size) * 2
                         + n * h_out * w_out * cout * 2)
    return pl.pallas_call(
        kernel,
        out_shape=jax.ShapeDtypeStruct((n, h_out, w_out, cout), jnp.bfloat16),
        grid=(n,),
        in_specs=[
            pl.BlockSpec((1, hp, wp, cmid), lambda i: (i, 0, 0, 0)),
            pl.BlockSpec((1, cmid), lambda i: (0, 0)),
            pl.BlockSpec((1, cmid), lambda i: (0, 0)),
            pl.BlockSpec((k * k, cmid, cout), lambda i: (0, 0, 0)),   # resident weights
            pl.BlockSpec((1, cout), lambda i: (0, 0)),
            pl.BlockSpec((1, h_out, w_out, csc), lambda i: (i, 0, 0, 0)),
            pl.BlockSpec((csc, cout), lambda i: (0, 0)),              # resident shortcut W
        ],
        out_specs=pl.BlockSpec((1, h_out, w_out, cout), lambda i: (i, 0, 0, 0)),
        scratch_shapes=[pltpu.VMEM((hp, wp, cmid), jnp.bfloat16)],
        compiler_params=pltpu.CompilerParams(
            dimension_semantics=("parallel",),
            vmem_limit_bytes=VMEM_LIMIT),
        cost_estimate=pl.CostEstimate(flops=flops, transcendentals=0,
                                      bytes_accessed=bytes_accessed),
    )(ypad, scale, shift, w_taps, bias, xs, wsc)


# ----------------------------- JAX-level glue ---------------------------------

def _prep_conv_w(w_oihw, cin_pad, cout_pad):
    """(Cout,Cin,kh,kw) -> bf16 (kh*kw, Cin_pad, Cout_pad) tap-major weights."""
    cout, cin, kh, kw = w_oihw.shape
    w = jnp.transpose(w_oihw, (2, 3, 1, 0))                 # (kh, kw, Cin, Cout)
    w = jnp.pad(w, ((0, 0), (0, 0), (0, cin_pad - cin), (0, cout_pad - cout)))
    return w.reshape(kh * kw, cin_pad, cout_pad).astype(jnp.bfloat16)


def residual_block_forward(x_nchw, params, *, kernel_size, stride, padding):
    n, cin, h, w = x_nchw.shape
    k, s, p = kernel_size, stride, padding
    cout = params["conv1_w"].shape[0]
    cp = _round_up(cin, LANE)      # lane-padded input channels
    cop = _round_up(cout, LANE)    # lane-padded output channels

    h_out = (h + 2 * p - k) // s + 1
    w_out = (w + 2 * p - k) // s + 1
    assert (h_out + 2 * p - k + 1, w_out + 2 * p - k + 1) == (h_out, w_out), \
        "conv2 must preserve spatial dims (2*padding == kernel_size - 1)"
    assert ((h - 1) // s + 1, (w - 1) // s + 1) == (h_out, w_out), \
        "shortcut and conv-block output shapes must match"

    # NCHW -> NHWC, lane-pad channels (padded lanes stay zero through BN/ReLU/conv
    # because gammas/betas/weights/biases are zero-padded).
    x = jnp.transpose(x_nchw, (0, 2, 3, 1)).astype(jnp.float32)
    x = jnp.pad(x, ((0, 0), (0, 0), (0, 0), (0, cp - cin)))

    g1 = jnp.pad(params["bn1_gamma"], (0, cp - cin))
    be1 = jnp.pad(params["bn1_beta"], (0, cp - cin))
    g2 = jnp.pad(params["bn2_gamma"], (0, cop - cout))
    be2 = jnp.pad(params["bn2_beta"], (0, cop - cout))

    w1 = _prep_conv_w(params["conv1_w"], cp, cop)            # (k*k, cp,  cop) bf16
    w2 = _prep_conv_w(params["conv2_w"], cop, cop)           # (k*k, cop, cop) bf16
    wsc = jnp.pad(jnp.transpose(params["shortcut_w"][:, :, 0, 0], (1, 0)),
                  ((0, cp - cin), (0, cop - cout))).astype(jnp.bfloat16)
    bias1 = jnp.pad(params["conv1_b"], (0, cop - cout)).astype(jnp.float32).reshape(1, cop)
    bias2 = jnp.pad(params["conv2_b"], (0, cop - cout)).astype(jnp.float32).reshape(1, cop)

    # ---- BN1 stats (only standalone reduction; BN1 is *applied* inside conv1) ----
    s1, q1 = bn_stats(x)
    scale1, shift1 = fold_bn(s1, q1, n * h * w, g1, be1)

    # ---- Conv1: fused BN1-ReLU + tap conv (stride s) + bias + BN2 stats ----
    xpad = jnp.pad(x, ((0, 0), (p, p), (p, p), (0, 0)))      # cheap 1x spatial pad, no im2col
    y1, s2, q2 = conv1_bn_fused(xpad, scale1, shift1, w1, bias1,
                                k=k, stride=s, pad=p, h_in=h, w_in=w,
                                h_out=h_out, w_out=w_out)
    scale2, shift2 = fold_bn(s2, q2, n * h_out * w_out, g2, be2)

    # ---- Conv2: fused BN2-ReLU + tap conv (stride 1) + bias + 1x1 shortcut + add ----
    y1pad = jnp.pad(y1, ((0, 0), (p, p), (p, p), (0, 0)))
    xs = x[:, ::s, ::s, :].astype(jnp.bfloat16)              # shortcut input (stride s)
    out = conv2_shortcut_fused(y1pad, scale2, shift2, w2, bias2, xs, wsc,
                               k=k, pad=p, h_in=h_out, w_in=w_out,
                               h_out=h_out, w_out=w_out)

    out = out[..., :cout].astype(jnp.float32)
    return jnp.transpose(out, (0, 3, 1, 2))                  # back to NCHW


# ----------------------------- pure-JAX reference -----------------------------

def ref_forward(x_nchw, params, *, kernel_size, stride, padding):
    x = jnp.transpose(x_nchw, (0, 2, 3, 1)).astype(jnp.float32)

    def bnr(hh, g, b):
        m = jnp.mean(hh, axis=(0, 1, 2), keepdims=True)
        v = jnp.mean((hh - m) ** 2, axis=(0, 1, 2), keepdims=True)
        return jnp.maximum((hh - m) * jax.lax.rsqrt(v + EPS) * g + b, 0.0)

    def conv(hh, w_oihw, bias, st, pad):
        w_hwio = jnp.transpose(w_oihw, (2, 3, 1, 0))
        y = jax.lax.conv_general_dilated(
            hh, w_hwio, (st, st), [(pad, pad), (pad, pad)],
            dimension_numbers=("NHWC", "HWIO", "NHWC"))
        return y if bias is None else y + bias

    hh = bnr(x, params["bn1_gamma"], params["bn1_beta"])
    hh = conv(hh, params["conv1_w"], params["conv1_b"], stride, padding)
    hh = bnr(hh, params["bn2_gamma"], params["bn2_beta"])
    hh = conv(hh, params["conv2_w"], params["conv2_b"], 1, padding)
    sc = conv(x, params["shortcut_w"], None, stride, 0)
    return jnp.transpose(hh + sc, (0, 3, 1, 2))


# ----------------------------------- main --------------------------------------

if __name__ == "__main__":
    N, Cin, H, W = 2, 4, 16, 16
    Cout, K, STRIDE, PAD = 8, 3, 1, 1

    key = jax.random.PRNGKey(0)
    k_x, k_w1, k_b1, k_w2, k_b2, k_ws = jax.random.split(key, 6)

    x = jax.random.normal(k_x, (N, Cin, H, W), jnp.float32)

    params = {
        # torch.nn.BatchNorm2d default init: weight=1, bias=0
        "bn1_gamma": jnp.ones((Cin,), jnp.float32),
        "bn1_beta": jnp.zeros((Cin,), jnp.float32),
        "bn2_gamma": jnp.ones((Cout,), jnp.float32),
        "bn2_beta": jnp.zeros((Cout,), jnp.float32),
        "conv1_w": 0.1 * jax.random.normal(k_w1, (Cout, Cin, K, K), jnp.float32),
        "conv1_b": 0.1 * jax.random.normal(k_b1, (Cout,), jnp.float32),
        "conv2_w": 0.1 * jax.random.normal(k_w2, (Cout, Cout, K, K), jnp.float32),
        "conv2_b": 0.1 * jax.random.normal(k_b2, (Cout,), jnp.float32),
        "shortcut_w": 0.1 * jax.random.normal(k_ws, (Cout, Cin, 1, 1), jnp.float32),
    }

    out = residual_block_forward(x, params, kernel_size=K, stride=STRIDE, padding=PAD)
    out = jax.block_until_ready(out)

    ref = jax.block_until_ready(
        ref_forward(x, params, kernel_size=K, stride=STRIDE, padding=PAD))

    assert out.shape == (N, Cout, H, W), out.shape
    max_err = float(jnp.abs(out - ref).max())
    # bf16 MXU operands + bf16 writeback (f32 accumulation) -> loosened tolerance.
    assert jnp.allclose(out, ref, atol=5e-2, rtol=5e-2), max_err

    print("KERNEL_OK")
</pallas_src>

<mosaic_0001>
module attributes {stable_mosaic.version = 11 : i64} {
  func.func @bn_stats_kernel(%arg0: i32, %arg1: memref<1x16x16x128xf32, #tpu.memory_space<vmem>>, %arg2: memref<1x8x128xf32, #tpu.memory_space<vmem>>, %arg3: memref<1x8x128xf32, #tpu.memory_space<vmem>>) attributes {dimension_semantics = [#tpu.dimension_semantics<parallel>], iteration_bounds = array<i64: 2>, scalar_prefetch = 0 : i64, scratch_operands = 0 : i64, tpu.core_type = #tpu.core_type<tc>, window_params = [{transform_indices = @transform_0, window_bounds = array<i64: 1, 16, 16, 128>}, {transform_indices = @transform_1, window_bounds = array<i64: 1, 8, 128>}, {transform_indices = @transform_2, window_bounds = array<i64: 1, 8, 128>}]} {
    %c0 = arith.constant 0 : index
    %c0_0 = arith.constant 0 : index
    %c0_1 = arith.constant 0 : index
    %c0_2 = arith.constant 0 : index
    %0 = vector.load %arg1[%c0, %c0_0, %c0_1, %c0_2] : memref<1x16x16x128xf32, #tpu.memory_space<vmem>>, vector<1x16x16x128xf32>
    %1 = vector.shape_cast %0 : vector<1x16x16x128xf32> to vector<16x16x128xf32>
    %2 = vector.shape_cast %1 : vector<16x16x128xf32> to vector<256x128xf32>
    %cst = arith.constant dense<0.000000e+00> : vector<128xf32>
    %3 = vector.multi_reduction <add>, %2, %cst [0] : vector<256x128xf32> to vector<128xf32>
    %4 = vector.shape_cast %3 : vector<128xf32> to vector<1x128xf32>
    %5 = arith.mulf %2, %2 : vector<256x128xf32>
    %cst_3 = arith.constant dense<0.000000e+00> : vector<128xf32>
    %6 = vector.multi_reduction <add>, %5, %cst_3 [0] : vector<256x128xf32> to vector<128xf32>
    %7 = vector.shape_cast %6 : vector<128xf32> to vector<1x128xf32>
    %8 = vector.shape_cast %4 : vector<1x128xf32> to vector<1x1x128xf32>
    %9 = vector.broadcast %8 : vector<1x1x128xf32> to vector<1x8x128xf32>
    %c0_4 = arith.constant 0 : index
    %c0_5 = arith.constant 0 : index
    %c0_6 = arith.constant 0 : index
    %10 = vector.load %arg2[%c0_4, %c0_5, %c0_6] : memref<1x8x128xf32, #tpu.memory_space<vmem>>, vector<1x8x128xf32>
    tpu.vector_store %arg2[%c0_4, %c0_5, %c0_6], %9 {strides = array<i32>} : memref<1x8x128xf32, #tpu.memory_space<vmem>>, vector<1x8x128xf32>,
    %11 = vector.shape_cast %7 : vector<1x128xf32> to vector<1x1x128xf32>
    %12 = vector.broadcast %11 : vector<1x1x128xf32> to vector<1x8x128xf32>
    %c0_7 = arith.constant 0 : index
    %c0_8 = arith.constant 0 : index
    %c0_9 = arith.constant 0 : index
    %13 = vector.load %arg3[%c0_7, %c0_8, %c0_9] : memref<1x8x128xf32, #tpu.memory_space<vmem>>, vector<1x8x128xf32>
    tpu.vector_store %arg3[%c0_7, %c0_8, %c0_9], %12 {strides = array<i32>} : memref<1x8x128xf32, #tpu.memory_space<vmem>>, vector<1x8x128xf32>,
    return
  }
  func.func @transform_0(%arg0: i32) -> (i32, i32, i32, i32) {
    %c0_i32 = arith.constant 0 : i32
    %c0_i32_0 = arith.constant 0 : i32
    %c0_i32_1 = arith.constant 0 : i32
    %c0_i32_2 = arith.constant 0 : i32
    return %arg0, %c0_i32, %c0_i32_0, %c0_i32_1 : i32, i32, i32, i32
  }
  func.func @transform_1(%arg0: i32) -> (i32, i32, i32) {
    %c0_i32 = arith.constant 0 : i32
    %c0_i32_0 = arith.constant 0 : i32
    %c0_i32_1 = arith.constant 0 : i32
    return %arg0, %c0_i32, %c0_i32_0 : i32, i32, i32
  }
  func.func @transform_2(%arg0: i32) -> (i32, i32, i32) {
    %c0_i32 = arith.constant 0 : i32
    %c0_i32_0 = arith.constant 0 : i32
    %c0_i32_1 = arith.constant 0 : i32
    return %arg0, %c0_i32, %c0_i32_0 : i32, i32, i32
  }
}

</mosaic_0001>

<bundles_post_ra>
// kernel: tpu_custom_call.1
= control target key start
LH: loop header
LB: loop body
LE: loop exit
PB: predicated region body
PF: predicated region fallthrough
CT: control target
= control target key end

     0   :  { %8 = vsyncpa [#allocation3], 0  ;;  %s895_s0 = inlined_call_operand.hbm [shape: f32[2,16,16,128], index: 0, kind: input, shape index: {}]   ;;  %s896_s1 = inlined_call_operand.hbm [shape: f32[2,8,128], index: 1, kind: output, shape index: {0}]   ;;  %s897_s2 = inlined_call_operand.hbm [shape: f32[2,8,128], index: 2, kind: output, shape index: {1}]  }
   0x1   :  { %10 = vsyncpa [#allocation3 + $0x1], 0 }
   0x2   :  { %11 = vsyncpa [#allocation4], 0 }
   0x3   :  { %13 = vsyncpa [#allocation4 + $0x1], 0 }
   0x4   :  { %14 = vsyncpa [#allocation7], 0 }
   0x5   :  { %16 = vsyncpa [#allocation7 + $0x1], 0  ;;  %s667_s9 = smov 0   ;;  %s669_s10 = smov 0  }
   0x6   :  { %s671_s11 = smov 0   ;;  %s673_s12 = smov 0  }
   0x7 LB: > { %s688_s13 = sadd.s32 4294967295, %s645_s12   ;;  %s447_s14 = sadd.s32 4294967294, %s645_s12   ;;  %s645_s12 = sphi %s673_s12, %s910_s12   ;;  %s641_s11 = sphi %s671_s11, %s909_s11   ;;  %s637_s10 = sphi %s669_s10, %s908_s10   ;;  %s633_s9 = sphi %s667_s9, %s907_s9  }
   0x8   : > { %s692_s15 = sadd.s32 1, %s645_s12   ;;  %s29_s16 = sadd.s32 1, %s641_s11 }
   0x9   : > { %s26_s17 = ssub.s32 %s645_s12, %s692_s15  ;;  %p36_p0 = scmp.ne.s32.totalorder %s641_s11, %s637_s10 }
   0xa   : > { %p27_p1 = scmp.eq.s32.totalorder %s26_s17, 0  ;;  %p37_p2 = scmp.eq.s32.totalorder %s645_s12, 0 }
   0xb   : > { %p42_p3 = scmp.ne.s32.totalorder %s637_s10, %s633_s9  ;;  %p43_p4 = scmp.eq.s32.totalorder %s688_s13, 0 }
   0xc   : > { %s704_s18 = scalar_select %p27_p1, %s641_s11, %s29_s16  }
   0xd   : > { %p706_p5 = por %p37_p2, %p36_p0  ;;  %p710_p6 = por %p43_p4, %p42_p3 }
   0xe   : > { %p66_p7 = scmp.eq.s32.totalorder %s688_s13, 1  ;;  %p72_p8 = scmp.eq.s32.totalorder %s447_s14, 1 }
   0xf   : > { %p481_p10 = scmp.lt.s32.totalorder %s645_s12, 2  ;;  %s118_s23 = sand.u32 1, %s641_s11  }
  0x10   : > { %p717_p11 = por %p66_p7, %p36_p0  ;;  %p721_p12 = por %p72_p8, %p42_p3 }
  0x11   : > { %s463_s24 = sshll.u32 %s645_s12, 12  ;;  %s450_s25 = sshll.u32 %s118_s23, 8 }
  0x12   : > { %s901_s21 = scalar_select %p717_p11, 1, 0 }
  0x13   : > { %s902_s22 = scalar_select %p721_p12, 1, 0 }
  0x14   : > { %s730_s28 = scalar_lea.hbm %s895_s0, %s463_s24  ;;  %s122_s29 = scalar_lea.vmem [#allocation2], %s450_s25 }
  0x15   : > { %s129_s30 = sshll.u32 %s122_s29, 4  ;;  %p734_p13 = pnand %p481_p10, %p706_p5  ;;  %s738_s30 = int_to_ptr.vmem [resolvable:$true] %s129_s30 }
  0x16   : > { %s740_s4 = scalar_lea.sflag [#allocation3], %s118_s23  ;;  %s517_s5 = scalar_lea.hbm %s730_s28, 4096 }
  0x17   : > { %p518_p0 = scmp.ne.s32.totalorder %s730_s28, %s517_s5  ;;  %p519_p1 = pneg %p734_p13 }
  0x18   : > { %s522_s8 = scalar_lea.hbm %s895_s0, 8192  ;;  %p523_p4 = scmp.lt.u32.totalorder %s730_s28, %s895_s0 }
  0x19   : > { %p520_p2 = pnand %p519_p1, %p518_p0  ;;  %p524_p5 = scmp.lt.u32.totalorder %s522_s8, %s517_s5 }
  0x1a   : > { %p526_p8 = scmp.lt.u32.totalorder %s517_s5, %s730_s28 }
  0x1b   : > { %p521_p3 = pneg %p520_p2  ;;  %p525_p7 = por %p524_p5, %p523_p4 }
  0x1d   : > { %p527_p10 = por %p526_p8, %p525_p7 }
  0x1f   : > { %p528_p9 = pnand %p527_p10, %p521_p3 }
  0x21   : > { %531 = shalt.err (!%p528_p9)
}
  0x22   : > { %s532_s17 = scalar_lea.vmem %s738_s30, 4096  ;;  %s647_s19 = smov [#allocation2]  }
  0x23   : > { %p533_p0 = scmp.ne.s32.totalorder %s738_s30, %s532_s17  ;;  %s537_s23 = sshll.u32 %s647_s19, 4  ;;  %s538_s23 = int_to_ptr.vmem [resolvable:$false] %s537_s23 }
  0x24   : > { %s539_s24 = scalar_lea.vmem %s538_s23, 8192  ;;  %p540_p11 = scmp.lt.s32.totalorder %s738_s30, %s538_s23 }
  0x25   : > { %p535_p2 = pnand %p533_p0, %p519_p1  ;;  %p541_p4 = scmp.lt.s32.totalorder %s539_s24, %s532_s17 }
  0x27   : > { %p536_p12 = pneg %p535_p2  ;;  %p542_p5 = por %p541_p4, %p540_p11 }
  0x29   : > { %p543_p7 = pnand %p542_p5, %p536_p12 }
  0x2b   : > { %546 = shalt.err (!%p543_p7)
}
  0x2c   : > { %s648_s25 = smov 128   ;;  %s649_s26 = smov 8  }
  0x2d   : > { %473 = dma.hbm_to_vmem [thread:$0]  (!%p734_p13), %s730_s28, 4096, %s738_s30, %s740_s4, %s648_s25, %s648_s25, %s649_s26  }
  0x2e   : > { %p453_p9 = scmp.ge.s32.totalorder %s645_s12, 1  ;;  %p137_p1 = scmp.lt.s32.totalorder %s645_s12, 3 }
  0x30   : > { %p138_p3 = pnand %p453_p9, %p137_p1 }
  0x31   : > { %s771_s27 = sand.u32 (!%p138_p3), 1, %s637_s10  }
  0x32   : > { %141 = sbr.rel (%p138_p3) target bundleno = 170 (0xaa), region = 24  ;;  %s454_s29 = sshll.u32 (!%p138_p3), %s771_s27, 8 }
  0x33   : > { %s144_s5 = scalar_lea.sflag (!%p138_p3), [#allocation3], %s771_s27  ;;  %s775_s6 = scalar_lea.vmem (!%p138_p3), [#allocation2], %s454_s29 }
  0x39   : > { %620 = dma.done.wait (%p710_p6), %s144_s5, 4096  }
  0x3a   : > { %622 = vsyncadd (%p710_p6), %s144_s5, 4294963200  ;;  %v173_v0 = vld [vmem:[%s775_s6] sm:$0xff]  ;;  %v174_v1 = vld [vmem:[%s775_s6 + $0x8] sm:$0xff]  ;;  %s455_s20 = sshll.u32 %s771_s27, 3  ;;  %s459_s3 = sshll.u32 %s688_s13, 7 }
  0x3b   : > { %v175_v2 = vld [vmem:[%s775_s6 + $0x10] sm:$0xff]  ;;  %v176_v3 = vld [vmem:[%s775_s6 + $0x18] sm:$0xff]  ;;  %v205_v4 = vadd.f32 %v174_v1, %v173_v0  ;;  %v242_v5 = vmul.f32 %v173_v0, %v173_v0  ;;  %v243_v6 = vmul.f32 %v174_v1, %v174_v1  ;;  %v177_v8 = vld [vmem:[%s775_s6 + $0x20] sm:$0xff]  ;;  %s165_s28 = scalar_lea.vmem [#allocation5], %s455_s20  ;;  %s815_s4 = scalar_lea.vmem [#allocation6], %s455_s20 }
  0x3c   : > { %v244_v7 = vmul.f32 %v175_v2, %v175_v2  ;;  %v245_v10 = vmul.f32 %v176_v3, %v176_v3  ;;  %v178_v12 = vld [vmem:[%s775_s6 + $0x28] sm:$0xff]  ;;  %v246_v14 = vmul.f32 %v177_v8, %v177_v8  ;;  %v179_v16 = vld [vmem:[%s775_s6 + $0x30] sm:$0xff]  ;;  %v180_v20 = vld [vmem:[%s775_s6 + $0x38] sm:$0xff]  ;;  %s332_s30 = sshll.u32 %s165_s28, 4  ;;  %s345_s7 = sshll.u32 %s815_s4, 4  ;;  %s818_s30 = int_to_ptr.vmem [resolvable:$true] %s332_s30  ;;  %s825_s7 = int_to_ptr.vmem [resolvable:$true] %s345_s7 }
  0x3d   : > { %v206_v9 = vadd.f32 %v205_v4, %v175_v2  ;;  %v274_v11 = vadd.f32 %v243_v6, %v242_v5  ;;  %v247_v18 = vmul.f32 %v178_v12, %v178_v12  ;;  %v248_v22 = vmul.f32 %v179_v16, %v179_v16  ;;  %v181_v24 = vld [vmem:[%s775_s6 + $0x40] sm:$0xff]  ;;  %v182_v28 = vld [vmem:[%s775_s6 + $0x48] sm:$0xff]  ;;  %v183_v32 = vld [vmem:[%s775_s6 + $0x50] sm:$0xff]  ;;  %s823_s16 = scalar_lea.hbm %s896_s1, %s459_s3  ;;  %s830_s19 = scalar_lea.hbm %s897_s2, %s459_s3 }
  0x3e   : > { %v249_v26 = vmul.f32 %v180_v20, %v180_v20  ;;  %v250_v30 = vmul.f32 %v181_v24, %v181_v24  ;;  %v251_v34 = vmul.f32 %v182_v28, %v182_v28  ;;  %v184_v36 = vld [vmem:[%s775_s6 + $0x58] sm:$0xff]  ;;  %v252_v38 = vmul.f32 %v183_v32, %v183_v32  ;;  %v185_v40 = vld [vmem:[%s775_s6 + $0x60] sm:$0xff]  ;;  %v186_v44 = vld [vmem:[%s775_s6 + $0x68] sm:$0xff]  ;;  %s314_s23 = scalar_lea.sflag [#allocation4], %s771_s27  ;;  %s547_s24 = scalar_lea.vmem %s818_s30, 128 }
  0x3f   : > { %v207_v13 = vadd.f32 %v206_v9, %v176_v3  ;;  %v275_v15 = vadd.f32 %v274_v11, %v244_v7  ;;  %v253_v42 = vmul.f32 %v184_v36, %v184_v36  ;;  %v254_v46 = vmul.f32 %v185_v40, %v185_v40  ;;  %v187_v48 = vld [vmem:[%s775_s6 + $0x70] sm:$0xff]  ;;  %v188_v52 = vld [vmem:[%s775_s6 + $0x78] sm:$0xff]  ;;  %v189_v56 = vld [vmem:[%s775_s6 + $0x80] sm:$0xff]  ;;  %p548_p6 = scmp.ne.s32.totalorder %s818_s30, %s547_s24  ;;  %p904_p11 = scmp.ne.s32.totalorder %s901_s21, 0 }
  0x40   : > { %v255_v50 = vmul.f32 %v186_v44, %v186_v44  ;;  %v256_v54 = vmul.f32 %v187_v48, %v187_v48  ;;  %v257_v58 = vmul.f32 %v188_v52, %v188_v52  ;;  %v190_v60 = vld [vmem:[%s775_s6 + $0x88] sm:$0xff]  ;;  %v258_v62 = vmul.f32 %v189_v56, %v189_v56  ;;  %v191_v0 = vld [vmem:[%s775_s6 + $0x90] sm:$0xff]  ;;  %v192_v4 = vld [vmem:[%s775_s6 + $0x98] sm:$0xff]  ;;  %s650_s25 = smov [#allocation5]  }
  0x41   : > { %v208_v17 = vadd.f32 %v207_v13, %v177_v8  ;;  %v276_v19 = vadd.f32 %v275_v15, %v245_v10  ;;  %v259_v2 = vmul.f32 %v190_v60, %v190_v60  ;;  %v260_v6 = vmul.f32 %v191_v0, %v191_v0  ;;  %v193_v8 = vld [vmem:[%s775_s6 + $0xa0] sm:$0xff]  ;;  %p549_p12 = pnand %p548_p6, %p904_p11  ;;  %s551_s26 = sshll.u32 %s650_s25, 4  ;;  %s552_s26 = int_to_ptr.vmem [resolvable:$false] %s551_s26 }
  0x42   : > { %v261_v10 = vmul.f32 %v192_v4, %v192_v4  ;;  %s553_s29 = scalar_lea.vmem %s552_s26, 256  ;;  %p554_p8 = scmp.lt.s32.totalorder %s818_s30, %s552_s26 }
  0x43   : > { %v209_v21 = vadd.f32 %v208_v17, %v178_v12  ;;  %v277_v23 = vadd.f32 %v276_v19, %v246_v14  ;;  %v194_v12 = vld [vmem:[%s775_s6 + $0xa8] sm:$0xff]  ;;  %v262_v14 = vmul.f32 %v193_v8, %v193_v8  ;;  %p550_p13 = pneg %p549_p12  ;;  %p555_p10 = scmp.lt.s32.totalorder %s553_s29, %s547_s24 }
  0x45   : > { %v210_v25 = vadd.f32 %v209_v21, %v179_v16  ;;  %v278_v27 = vadd.f32 %v277_v23, %v247_v18  ;;  %v195_v16 = vld [vmem:[%s775_s6 + $0xb0] sm:$0xff]  ;;  %v263_v18 = vmul.f32 %v194_v12, %v194_v12  ;;  %p556_p0 = por %p555_p10, %p554_p8 }
  0x47   : > { %v211_v29 = vadd.f32 %v210_v25, %v180_v20  ;;  %v279_v31 = vadd.f32 %v278_v27, %v248_v22  ;;  %v196_v20 = vld [vmem:[%s775_s6 + $0xb8] sm:$0xff]  ;;  %v264_v22 = vmul.f32 %v195_v16, %v195_v16  ;;  %p557_p2 = pnand %p556_p0, %p550_p13 }
  0x49   : > { %v212_v33 = vadd.f32 %v211_v29, %v181_v24  ;;  %v280_v35 = vadd.f32 %v279_v31, %v249_v26  ;;  %v197_v24 = vld [vmem:[%s775_s6 + $0xc0] sm:$0xff]  ;;  %v265_v26 = vmul.f32 %v196_v20, %v196_v20 }
  0x4b   : > { %v213_v37 = vadd.f32 %v212_v33, %v182_v28  ;;  %v281_v39 = vadd.f32 %v280_v35, %v250_v30  ;;  %v198_v28 = vld [vmem:[%s775_s6 + $0xc8] sm:$0xff]  ;;  %v266_v30 = vmul.f32 %v197_v24, %v197_v24 }
  0x4d   : > { %v214_v41 = vadd.f32 %v213_v37, %v183_v32  ;;  %v282_v43 = vadd.f32 %v281_v39, %v251_v34  ;;  %v199_v32 = vld [vmem:[%s775_s6 + $0xd0] sm:$0xff]  ;;  %v267_v34 = vmul.f32 %v198_v28, %v198_v28 }
  0x4f   : > { %v215_v45 = vadd.f32 %v214_v41, %v184_v36  ;;  %v283_v47 = vadd.f32 %v282_v43, %v252_v38  ;;  %v200_v36 = vld [vmem:[%s775_s6 + $0xd8] sm:$0xff]  ;;  %v268_v38 = vmul.f32 %v199_v32, %v199_v32 }
  0x51   : > { %v216_v49 = vadd.f32 %v215_v45, %v185_v40  ;;  %v284_v51 = vadd.f32 %v283_v47, %v253_v42  ;;  %v201_v40 = vld [vmem:[%s775_s6 + $0xe0] sm:$0xff]  ;;  %v269_v42 = vmul.f32 %v200_v36, %v200_v36 }
  0x53   : > { %v217_v53 = vadd.f32 %v216_v49, %v186_v44  ;;  %v285_v55 = vadd.f32 %v284_v51, %v254_v46  ;;  %v202_v44 = vld [vmem:[%s775_s6 + $0xe8] sm:$0xff]  ;;  %v270_v46 = vmul.f32 %v201_v40, %v201_v40 }
  0x55   : > { %v218_v57 = vadd.f32 %v217_v53, %v187_v48  ;;  %v286_v59 = vadd.f32 %v285_v55, %v255_v50  ;;  %v203_v48 = vld [vmem:[%s775_s6 + $0xf0] sm:$0xff]  ;;  %v271_v50 = vmul.f32 %v202_v44, %v202_v44 }
  0x57   : > { %v219_v61 = vadd.f32 %v218_v57, %v188_v52  ;;  %v287_v63 = vadd.f32 %v286_v59, %v256_v54  ;;  %v204_v52 = vld [vmem:[%s775_s6 + $0xf8] sm:$0xff]  ;;  %v272_v54 = vmul.f32 %v203_v48, %v203_v48 }
  0x58   : > { %v273_v57 = vmul.f32 %v204_v52, %v204_v52 }
  0x59   : > { %v220_v1 = vadd.f32 %v219_v61, %v189_v56  ;;  %v288_v3 = vadd.f32 %v287_v63, %v257_v58 }
  0x5b   : > { %v221_v5 = vadd.f32 %v220_v1, %v190_v60  ;;  %v289_v7 = vadd.f32 %v288_v3, %v258_v62 }
  0x5d   : > { %v222_v9 = vadd.f32 %v221_v5, %v191_v0  ;;  %v290_v11 = vadd.f32 %v289_v7, %v259_v2 }
  0x5f   : > { %v223_v13 = vadd.f32 %v222_v9, %v192_v4  ;;  %v291_v15 = vadd.f32 %v290_v11, %v260_v6 }
  0x61   : > { %v224_v17 = vadd.f32 %v223_v13, %v193_v8  ;;  %v292_v19 = vadd.f32 %v291_v15, %v261_v10 }
  0x63   : > { %v225_v21 = vadd.f32 %v224_v17, %v194_v12  ;;  %v293_v23 = vadd.f32 %v292_v19, %v262_v14 }
  0x65   : > { %v226_v25 = vadd.f32 %v225_v21, %v195_v16  ;;  %v294_v27 = vadd.f32 %v293_v23, %v263_v18 }
  0x67   : > { %v227_v29 = vadd.f32 %v226_v25, %v196_v20  ;;  %v295_v31 = vadd.f32 %v294_v27, %v264_v22 }
  0x69   : > { %v228_v33 = vadd.f32 %v227_v29, %v197_v24  ;;  %v296_v35 = vadd.f32 %v295_v31, %v265_v26 }
  0x6b   : > { %v229_v37 = vadd.f32 %v228_v33, %v198_v28  ;;  %v297_v39 = vadd.f32 %v296_v35, %v266_v30 }
  0x6d   : > { %v230_v41 = vadd.f32 %v229_v37, %v199_v32  ;;  %v298_v43 = vadd.f32 %v297_v39, %v267_v34 }
  0x6f   : > { %v231_v45 = vadd.f32 %v230_v41, %v200_v36  ;;  %v299_v47 = vadd.f32 %v298_v43, %v268_v38 }
  0x71   : > { %v232_v49 = vadd.f32 %v231_v45, %v201_v40  ;;  %v300_v51 = vadd.f32 %v299_v47, %v269_v42 }
  0x73   : > { %v233_v53 = vadd.f32 %v232_v49, %v202_v44  ;;  %v301_v55 = vadd.f32 %v300_v51, %v270_v46 }
  0x75   : > { %v234_v56 = vadd.f32 %v233_v53, %v203_v48  ;;  %v302_v58 = vadd.f32 %v301_v55, %v271_v50 }
  0x77   : > { %v235_v59 = vadd.f32 %v234_v56, %v204_v52  ;;  %v303_v60 = vadd.f32 %v302_v58, %v272_v54 }
  0x79   : > { %v236_v61 = vrot.slane %v235_v59, 4  ;;  %v304_v62 = vadd.f32 %v303_v60, %v273_v57 }
  0x7b   : > { %v237_v63 = vadd.f32 %v236_v61, %v235_v59  ;;  %v305_v0 = vrot.slane %v304_v62, 4 }
  0x7d   : > { %v238_v1 = vrot.slane %v237_v63, 2  ;;  %v306_v2 = vadd.f32 %v305_v0, %v304_v62 }
  0x7f   : > { %v239_v3 = vadd.f32 %v238_v1, %v237_v63  ;;  %v307_v4 = vrot.slane %v306_v2, 2 }
  0x81   : > { %v240_v5 = vrot.slane %v239_v3, 1  ;;  %v308_v6 = vadd.f32 %v307_v4, %v306_v2 }
  0x83   : > { %v241_v7 = vadd.f32 %v240_v5, %v239_v3  ;;  %v309_v8 = vrot.slane %v308_v6, 1 }
  0x85   : > { %311 = vst [vmem:[%s165_s28] sm:$0xff] %v241_v7  ;;  %v310_v9 = vadd.f32 %v309_v8, %v308_v6 }
  0x86   : > { %560 = shalt.err (!%p557_p2)
}
  0x87   : > { %s561_s5 = scalar_lea.hbm %s823_s16, 128  ;;  %s565_s28 = scalar_lea.hbm %s896_s1, 256 }
  0x88   : > { %p562_p4 = scmp.ne.s32.totalorder %s823_s16, %s561_s5  ;;  %p566_p9 = scmp.lt.u32.totalorder %s823_s16, %s896_s1 }
  0x89   : > { %p567_p1 = scmp.lt.u32.totalorder %s565_s28, %s561_s5  ;;  %p569_p6 = scmp.lt.u32.totalorder %s561_s5, %s823_s16 }
  0x8a   : > { %p563_p5 = pnand %p562_p4, %p904_p11 }
  0x8b   : > { %p568_p3 = por %p567_p1, %p566_p9 }
  0x8c   : > { %p564_p7 = pneg %p563_p5 }
  0x8d   : > { %p570_p12 = por %p569_p6, %p568_p3 }
  0x8f   : > { %p571_p13 = pnand %p570_p12, %p564_p7 }
  0x91   : > { %574 = shalt.err (!%p571_p13)
}
  0x92   : > { %466 = dma.vmem_to_hbm [thread:$0]  (%p904_p11), %s818_s30, 128, %s823_s16, %s314_s23   ;;  %312 = vst [vmem:[%s815_s4] sm:$0xff] %v310_v9 }
  0x93   : > { %s319_s14 = scalar_lea.sflag [#allocation7], %s771_s27  ;;  %s575_s13 = scalar_lea.vmem %s825_s7, 128 }
  0x94   : > { %p576_p8 = scmp.ne.s32.totalorder %s825_s7, %s575_s13  ;;  %s651_s17 = smov [#allocation6]  }
  0x95   : > { %s579_s24 = sshll.u32 %s651_s17, 4  ;;  %s580_s24 = int_to_ptr.vmem [resolvable:$false] %s579_s24 }
  0x96   : > { %p577_p10 = pnand %p576_p8, %p904_p11  ;;  %s581_s25 = scalar_lea.vmem %s580_s24, 256 }
  0x97   : > { %p582_p2 = scmp.lt.s32.totalorder %s825_s7, %s580_s24  ;;  %p583_p4 = scmp.lt.s32.totalorder %s581_s25, %s575_s13 }
  0x98   : > { %p578_p0 = pneg %p577_p10 }
  0x99   : > { %p584_p5 = por %p583_p4, %p582_p2 }
  0x9b   : > { %p585_p7 = pnand %p584_p5, %p578_p0 }
  0x9d   : > { %588 = shalt.err (!%p585_p7)
}
  0x9e   : > { %s589_s27 = scalar_lea.hbm %s830_s19, 128  ;;  %s593_s16 = scalar_lea.hbm %s897_s2, 256 }
  0x9f   : > { %p590_p9 = scmp.ne.s32.totalorder %s830_s19, %s589_s27  ;;  %p594_p6 = scmp.lt.u32.totalorder %s830_s19, %s897_s2 }
  0xa0   : > { %p595_p12 = scmp.lt.u32.totalorder %s593_s16, %s589_s27  ;;  %p597_p8 = scmp.lt.u32.totalorder %s589_s27, %s830_s19 }
  0xa1   : > { %p591_p1 = pnand %p590_p9, %p904_p11 }
  0xa2   : > { %p596_p13 = por %p595_p12, %p594_p6 }
  0xa3   : > { %p592_p3 = pneg %p591_p1 }
  0xa4   : > { %p598_p10 = por %p597_p8, %p596_p13 }
  0xa6   : > { %p599_p0 = pnand %p598_p10, %p592_p3 }
  0xa8   : > { %602 = shalt.err (!%p599_p0)
}
  0xa9   : > { %467 = dma.vmem_to_hbm [thread:$0]  (%p904_p11), %s825_s7, 128, %s830_s19, %s319_s14  }
  0xaa PF: > { %s357_s29 = sand.u32 1, %s633_s9   ;;  %p905_p2 = scmp.ne.s32.totalorder %s902_s22, 0 }
  0xab   : > { %p906_p4 = scmp.ge.s32.totalorder %s645_s12, 2  ;;  %s358_s5 = scalar_lea.sflag [#allocation4], %s357_s29 }
  0xad   : > { %p475_p5 = pnand %p906_p4, %p905_p2 }
  0xaf   : > { %624 = dma.done.wait (!%p475_p5), %s358_s5, 128  }
  0xb0   : > { %626 = vsyncadd (!%p475_p5), %s358_s5, 4294967168  ;;  %s367_s6 = scalar_lea.sflag [#allocation7], %s357_s29 }
  0xb1   : > { %628 = dma.done.wait (!%p475_p5), %s367_s6, 128  }
  0xb2   : > { %630 = vsyncadd (!%p475_p5), %s367_s6, 4294967168  ;;  %p19_p11 = scmp.ge.s32.totalorder %s692_s15, 4   ;;  %s907_s9 = smov %s637_s10 }
  0xb3   : > { %s908_s10 = smov %s641_s11  ;;  %s909_s11 = smov %s704_s18 }
  0xb4   : > { %s910_s12 = smov %s692_s15  ;;  %21 = sbr.rel (!%p19_p11) target bundleno = 7 (0x7), region = 86 }
  0xbb   :  { %372 = vsyncpa [#allocation3], 1 }
  0xbc   :  { %374 = vsyncpa [#allocation3 + $0x1], 1 }
  0xbd   :  { %375 = vsyncpa [#allocation4], 1 }
  0xbe   :  { %377 = vsyncpa [#allocation4 + $0x1], 1 }
  0xbf   :  { %378 = vsyncpa [#allocation7], 1 }
  0xc0   :  { %380 = vsyncpa [#allocation7 + $0x1], 1 }

</bundles_post_ra>
